<compile_context>
chip_gen: v6e
topology: v6e:2x2x1
jax: 0.10.0
libtpu: 0.0.40
codegen_flags: <defaults>
</compile_context>

<pallas_src>
import jax
import jax.numpy as jnp
from jax.experimental import pallas as pl
from jax.experimental.pallas import tpu as pltpu


def _round_up(x: int, m: int) -> int:
    return ((x + m - 1) // m) * m


def _policy_kernel(x_ref, w1_ref, b1_ref, w2_ref, b2_ref, o_ref):
    # Hidden layer: (TB, S) @ (S, 64) + (1, 64), ReLU.
    h = jnp.dot(x_ref[...], w1_ref[...], preferred_element_type=jnp.float32)
    h = jnp.maximum(h + b1_ref[...], 0.0)

    # Output layer: (TB, 64) @ (64, A) + (1, A).
    logits = jnp.dot(h, w2_ref[...], preferred_element_type=jnp.float32)
    logits = logits + b2_ref[...]

    # Numerically stable softmax along the last dim.  The approximate
    # reciprocal's per-row scale error is cancelled exactly by the final
    # exact renormalization below.
    m = jnp.max(logits, axis=-1, keepdims=True)
    e = jnp.exp(logits - m)
    inv_sum = pl.reciprocal(jnp.sum(e, axis=-1, keepdims=True), approx=True)
    probs = e * inv_sum

    # clamp + renormalize (matches torch.clamp then probs / probs.sum(-1, keepdim=True)).
    probs = jnp.clip(probs, 1e-8, 1.0 - 1e-8)
    inv_renorm = pl.reciprocal(jnp.sum(probs, axis=-1, keepdims=True), approx=False)

    o_ref[...] = (probs * inv_renorm).astype(o_ref.dtype)


def policy_network_forward(x, w1, b1, w2, b2, *, block_b: int = 8192):
    """x: (B, state_dim) f32; w1: (state_dim, 64); b1: (1, 64);
    w2: (64, action_dim); b2: (1, action_dim). Returns (B, action_dim) f32."""
    B, S = x.shape
    H = w1.shape[1]
    A = w2.shape[1]

    # Batch tile: as large as possible (multiple of 8 sublanes, never wildly
    # larger than B) to amortize per-grid-step pipeline overhead.
    TB = min(block_b, _round_up(B, 8))
    # v7x megacore: for large batches make sure the grid has >= 2 steps so the
    # "parallel" batch axis can actually be sharded across both TensorCores.
    if B >= 1024 and pl.cdiv(B, TB) < 2:
        TB = _round_up(pl.cdiv(B, 2), 8)

    grid = (pl.cdiv(B, TB),)  # ragged last block is fine: rows are independent

    cost = pl.CostEstimate(
        flops=2 * B * H * (S + A) + 10 * B * A,
        bytes_accessed=4 * (B * S + B * A + S * H + H + H * A + A),
        transcendentals=B * (A + 2),
    )

    out = pl.pallas_call(
        _policy_kernel,
        out_shape=jax.ShapeDtypeStruct((B, A), jnp.float32),
        grid=grid,
        in_specs=[
            pl.BlockSpec((TB, S), lambda i: (i, 0)),   # x: tiled over batch
            pl.BlockSpec((S, H), lambda i: (0, 0)),    # W1: resident in VMEM
            pl.BlockSpec((1, H), lambda i: (0, 0)),    # b1: resident
            pl.BlockSpec((H, A), lambda i: (0, 0)),    # W2: resident (no padding)
            pl.BlockSpec((1, A), lambda i: (0, 0)),    # b2: resident
        ],
        out_specs=pl.BlockSpec((TB, A), lambda i: (i, 0)),  # compact output
        compiler_params=pltpu.CompilerParams(
            dimension_semantics=("parallel",),
            vmem_limit_bytes=32 * 1024 * 1024,
        ),
        cost_estimate=cost,
    )(
        x.astype(jnp.float32),
        w1.astype(jnp.float32),
        b1.astype(jnp.float32),
        w2.astype(jnp.float32),
        b2.astype(jnp.float32),
    )
    return out


def init_params(key, state_dim, action_dim, hidden=64):
    """Deterministic PyTorch-style uniform(-1/sqrt(fan_in), 1/sqrt(fan_in)) init."""
    k1, k2, k3, k4 = jax.random.split(key, 4)
    lim1 = 1.0 / jnp.sqrt(jnp.float32(state_dim))
    lim2 = 1.0 / jnp.sqrt(jnp.float32(hidden))
    w1 = jax.random.uniform(k1, (state_dim, hidden), jnp.float32, -lim1, lim1)
    b1 = jax.random.uniform(k2, (1, hidden), jnp.float32, -lim1, lim1)
    w2 = jax.random.uniform(k3, (hidden, action_dim), jnp.float32, -lim2, lim2)
    b2 = jax.random.uniform(k4, (1, action_dim), jnp.float32, -lim2, lim2)
    return w1, b1, w2, b2


def _reference(x, w1, b1, w2, b2):
    h = jnp.maximum(x @ w1 + b1, 0.0)
    logits = h @ w2 + b2
    p = jax.nn.softmax(logits, axis=-1)
    p = jnp.clip(p, 1e-8, 1.0 - 1e-8)
    return p / jnp.sum(p, axis=-1, keepdims=True)


if __name__ == "__main__":
    state_dim, action_dim = 16, 8

    key = jax.random.PRNGKey(0)
    kx, kp, kx2, kx3 = jax.random.split(key, 4)
    w1, b1, w2, b2 = init_params(kp, state_dim, action_dim)

    # Small case (single grid step, exact tile).
    x = jax.random.normal(kx, (8, state_dim), jnp.float32)
    probs = jax.block_until_ready(policy_network_forward(x, w1, b1, w2, b2))
    p_ref = _reference(x, w1, b1, w2, b2)
    assert probs.shape == (8, action_dim)
    assert jnp.allclose(probs, p_ref, atol=1e-6), "mismatch vs reference (B=8)"
    assert jnp.allclose(jnp.sum(probs, axis=-1), 1.0, atol=1e-6)

    # Non-multiple batch exercising the ragged-last-block path (no wrapper pad).
    x2 = jax.random.normal(kx2, (300, state_dim), jnp.float32)
    probs2 = jax.block_until_ready(
        policy_network_forward(x2, w1, b1, w2, b2, block_b=128)
    )
    p_ref2 = _reference(x2, w1, b1, w2, b2)
    assert probs2.shape == (300, action_dim)
    assert jnp.allclose(probs2, p_ref2, atol=1e-6), "mismatch vs reference (B=300)"
    assert jnp.allclose(jnp.sum(probs2, axis=-1), 1.0, atol=1e-6)

    # Larger batch exercising the >=2-grid-step (megacore) split path.
    x3 = jax.random.normal(kx3, (2048, state_dim), jnp.float32)
    probs3 = jax.block_until_ready(policy_network_forward(x3, w1, b1, w2, b2))
    p_ref3 = _reference(x3, w1, b1, w2, b2)
    assert probs3.shape == (2048, action_dim)
    assert jnp.allclose(probs3, p_ref3, atol=1e-6), "mismatch vs reference (B=2048)"
    assert jnp.allclose(jnp.sum(probs3, axis=-1), 1.0, atol=1e-6)

    print("KERNEL_OK")
</pallas_src>

<mosaic_0001>
module attributes {stable_mosaic.version = 11 : i64} {
  func.func @_policy_kernel(%arg0: i32, %arg1: memref<8x16xf32, #tpu.memory_space<vmem>>, %arg2: memref<16x64xf32, #tpu.memory_space<vmem>>, %arg3: memref<1x64xf32, #tpu.memory_space<vmem>>, %arg4: memref<64x8xf32, #tpu.memory_space<vmem>>, %arg5: memref<1x8xf32, #tpu.memory_space<vmem>>, %arg6: memref<8x8xf32, #tpu.memory_space<vmem>>) attributes {dimension_semantics = [#tpu.dimension_semantics<parallel>], iteration_bounds = array<i64: 1>, scalar_prefetch = 0 : i64, scratch_operands = 0 : i64, tpu.core_type = #tpu.core_type<tc>, window_params = [{transform_indices = @transform_0, window_bounds = array<i64: 8, 16>}, {pipeline_mode = #tpu.pipeline_mode<synchronous>, transform_indices = @transform_1, window_bounds = array<i64: 16, 64>}, {pipeline_mode = #tpu.pipeline_mode<synchronous>, transform_indices = @transform_2, window_bounds = array<i64: 1, 64>}, {pipeline_mode = #tpu.pipeline_mode<synchronous>, transform_indices = @transform_3, window_bounds = array<i64: 64, 8>}, {pipeline_mode = #tpu.pipeline_mode<synchronous>, transform_indices = @transform_4, window_bounds = array<i64: 1, 8>}, {transform_indices = @transform_5, window_bounds = array<i64: 8, 8>}]} {
    %c0 = arith.constant 0 : index
    %c0_0 = arith.constant 0 : index
    %0 = vector.load %arg1[%c0, %c0_0] : memref<8x16xf32, #tpu.memory_space<vmem>>, vector<8x16xf32>
    %c0_1 = arith.constant 0 : index
    %c0_2 = arith.constant 0 : index
    %1 = vector.load %arg2[%c0_1, %c0_2] : memref<16x64xf32, #tpu.memory_space<vmem>>, vector<16x64xf32>
    %cst = arith.constant dense<0.000000e+00> : vector<8x64xf32>
    %2 = tpu.matmul %0, %1, %cst {dimension_numbers = #tpu.dot_dimension_numbers<[1], [0], [0], [1], [0, 0, 1, 1], [], []>} : vector<8x16xf32>, vector<16x64xf32>, vector<8x64xf32> -> vector<8x64xf32>
    %c0_3 = arith.constant 0 : index
    %c0_4 = arith.constant 0 : index
    %3 = vector.load %arg3[%c0_3, %c0_4] : memref<1x64xf32, #tpu.memory_space<vmem>>, vector<1x64xf32>
    %4 = vector.broadcast %3 : vector<1x64xf32> to vector<8x64xf32>
    %5 = arith.addf %2, %4 : vector<8x64xf32>
    %cst_5 = arith.constant 0.000000e+00 : f32
    %6 = vector.broadcast %cst_5 : f32 to vector<8x64xf32>
    %7 = arith.maximumf %5, %6 : vector<8x64xf32>
    %c0_6 = arith.constant 0 : index
    %c0_7 = arith.constant 0 : index
    %8 = vector.load %arg4[%c0_6, %c0_7] : memref<64x8xf32, #tpu.memory_space<vmem>>, vector<64x8xf32>
    %cst_8 = arith.constant dense<0.000000e+00> : vector<8x8xf32>
    %9 = tpu.matmul %7, %8, %cst_8 {dimension_numbers = #tpu.dot_dimension_numbers<[1], [0], [0], [1], [0, 0, 1, 1], [], []>} : vector<8x64xf32>, vector<64x8xf32>, vector<8x8xf32> -> vector<8x8xf32>
    %c0_9 = arith.constant 0 : index
    %c0_10 = arith.constant 0 : index
    %10 = vector.load %arg5[%c0_9, %c0_10] : memref<1x8xf32, #tpu.memory_space<vmem>>, vector<1x8xf32>
    %11 = vector.broadcast %10 : vector<1x8xf32> to vector<8x8xf32>
    %12 = arith.addf %9, %11 : vector<8x8xf32>
    %cst_11 = arith.constant dense<0xFF800000> : vector<8xf32>
    %13 = vector.multi_reduction <maximumf>, %12, %cst_11 [1] : vector<8x8xf32> to vector<8xf32>
    %14 = vector.shape_cast %13 : vector<8xf32> to vector<8x1xf32>
    %15 = vector.broadcast %14 : vector<8x1xf32> to vector<8x8xf32>
    %16 = arith.subf %12, %15 : vector<8x8xf32>
    %17 = math.exp %16 : vector<8x8xf32>
    %cst_12 = arith.constant dense<0.000000e+00> : vector<8xf32>
    %18 = vector.multi_reduction <add>, %17, %cst_12 [1] : vector<8x8xf32> to vector<8xf32>
    %19 = vector.shape_cast %18 : vector<8xf32> to vector<8x1xf32>
    %20 = tpu.reciprocal %19 {approx = true} : vector<8x1xf32> -> vector<8x1xf32>
    %21 = vector.broadcast %20 : vector<8x1xf32> to vector<8x8xf32>
    %22 = arith.mulf %17, %21 : vector<8x8xf32>
    %cst_13 = arith.constant 9.99999993E-9 : f32
    %cst_14 = arith.constant 1.000000e+00 : f32
    %23 = vector.broadcast %cst_13 : f32 to vector<8x8xf32>
    %24 = arith.maximumf %23, %22 : vector<8x8xf32>
    %25 = vector.broadcast %cst_14 : f32 to vector<8x8xf32>
    %26 = arith.minimumf %25, %24 : vector<8x8xf32>
    %cst_15 = arith.constant dense<0.000000e+00> : vector<8xf32>
    %27 = vector.multi_reduction <add>, %26, %cst_15 [1] : vector<8x8xf32> to vector<8xf32>
    %28 = vector.shape_cast %27 : vector<8xf32> to vector<8x1xf32>
    %29 = tpu.reciprocal %28 : vector<8x1xf32> -> vector<8x1xf32>
    %30 = vector.broadcast %29 : vector<8x1xf32> to vector<8x8xf32>
    %31 = arith.mulf %26, %30 : vector<8x8xf32>
    %c0_16 = arith.constant 0 : index
    %c0_17 = arith.constant 0 : index
    %32 = vector.load %arg6[%c0_16, %c0_17] : memref<8x8xf32, #tpu.memory_space<vmem>>, vector<8x8xf32>
    tpu.vector_store %arg6[%c0_16, %c0_17], %31 {strides = array<i32>} : memref<8x8xf32, #tpu.memory_space<vmem>>, vector<8x8xf32>,
    return
  }
  func.func @transform_0(%arg0: i32) -> (i32, i32) {
    %c0_i32 = arith.constant 0 : i32
    %c0_i32_0 = arith.constant 0 : i32
    return %arg0, %c0_i32 : i32, i32
  }
  func.func @transform_1(%arg0: i32) -> (i32, i32) {
    %c0_i32 = arith.constant 0 : i32
    %c0_i32_0 = arith.constant 0 : i32
    %c0_i32_1 = arith.constant 0 : i32
    return %c0_i32, %c0_i32_0 : i32, i32
  }
  func.func @transform_2(%arg0: i32) -> (i32, i32) {
    %c0_i32 = arith.constant 0 : i32
    %c0_i32_0 = arith.constant 0 : i32
    %c0_i32_1 = arith.constant 0 : i32
    return %c0_i32, %c0_i32_0 : i32, i32
  }
  func.func @transform_3(%arg0: i32) -> (i32, i32) {
    %c0_i32 = arith.constant 0 : i32
    %c0_i32_0 = arith.constant 0 : i32
    %c0_i32_1 = arith.constant 0 : i32
    return %c0_i32, %c0_i32_0 : i32, i32
  }
  func.func @transform_4(%arg0: i32) -> (i32, i32) {
    %c0_i32 = arith.constant 0 : i32
    %c0_i32_0 = arith.constant 0 : i32
    %c0_i32_1 = arith.constant 0 : i32
    return %c0_i32, %c0_i32_0 : i32, i32
  }
  func.func @transform_5(%arg0: i32) -> (i32, i32) {
    %c0_i32 = arith.constant 0 : i32
    %c0_i32_0 = arith.constant 0 : i32
    return %arg0, %c0_i32 : i32, i32
  }
}

</mosaic_0001>

<bundles_post_ra>
// kernel: tpu_custom_call.1
= control target key start
LH: loop header
LB: loop body
LE: loop exit
PB: predicated region body
PF: predicated region fallthrough
CT: control target
= control target key end

     0   :  { %v302_v1 = vmov 0.0   ;;  %vm303_vm0 = vmmov 0   ;;  %vm31_vm1 = vcmask 130048   ;;  %s383_s0 = inlined_call_operand.vmem [shape: f32[8,16], index: 0, kind: input, shape index: {}]   ;;  %s384_s1 = inlined_call_operand.vmem [shape: f32[16,64], index: 1, kind: input, shape index: {}]   ;;  %s385_s2 = inlined_call_operand.vmem [shape: f32[1,64], index: 2, kind: input, shape index: {}]   ;;  %s386_s3 = inlined_call_operand.vmem [shape: f32[64,8], index: 3, kind: input, shape index: {}]   ;;  %s387_s4 = inlined_call_operand.vmem [shape: f32[1,8], index: 4, kind: input, shape index: {}]   ;;  %s388_s5 = inlined_call_operand.hbm [shape: f32[8,8], index: 5, kind: output, shape index: {}]  }
   0x1   :  { %v23_v0 = vld [vmem:[%s384_s1 + $0x8] sm:$0xff]  ;;  %245 = vmatprep.subr.mxu0 %v302_v1  ;;  %v22_v2 = vld [vmem:[%s384_s1] sm:$0xff]  ;;  %249 = vmatprep.mubr.msk.f32.mxu0 %vm303_vm0, %v302_v1  ;;  %v113_v3 = vld [vmem:[%s386_s3 + $0x38] sm:$0xff] }
   0x2   :  { %246 = vmatpush3.msra.mxu0 %v23_v0  ;;  %v21_v4 = vld [vmem:[%s383_s0] sm:$0xff]  ;;  %252 = vmatprep.subr.mxu1 %v302_v1  ;;  %v112_v5 = vld [vmem:[%s386_s3 + $0x30] sm:$0xff] }
   0x3   :  { %247 = vmatprep.subr.mxu0 %v302_v1  ;;  %253 = vmatpush3.msra.mxu1 %v113_v3 }
   0x4   :  { %10 = vsyncpa [#allocation3], 0  ;;  %248 = vmatpush3.msra.mxu0 %v22_v2  ;;  %254 = vmatprep.subr.mxu1 %v302_v1  ;;  %v111_v6 = vld [vmem:[%s386_s3 + $0x28] sm:$0xff]  ;;  %v110_v7 = vld [vmem:[%s386_s3 + $0x20] sm:$0xff]  ;;  %vm121_vm2 = vcmask 523264   ;;  %vm195_vm3 = vcmask 64512  }
   0x5   :  { %250 = vmatmul.mubr.msk.f32.vlgmr.msra.gmra.mxu0 %vm31_vm1, %v21_v4  ;;  %255 = vmatpush3.msra.mxu1 %v112_v5  ;;  %v109_v8 = vld [vmem:[%s386_s3 + $0x18] sm:$0xff]  ;;  %v108_v9 = vld [vmem:[%s386_s3 + $0x10] sm:$0xff]  ;;  %v107_v10 = vld [vmem:[%s386_s3 + $0x8] sm:$0xff] }
   0x6   :  { %256 = vmatprep.subr.mxu1 %v302_v1  ;;  %268 = vmatprep.mubr.msk.f32.mxu1 %vm303_vm0, %v302_v1  ;;  %v106_v11 = vld [vmem:[%s386_s3] sm:$0xff] }
   0x7   :  { %257 = vmatpush3.msra.mxu1 %v111_v6  ;;  %v229_v12 = vld [vmem:[%s385_s2] ss:$0 sm:$0xff]  ;;  %s304_s2 = smov [#allocation2]  }
   0x8   :  { %258 = vmatprep.subr.mxu1 %v302_v1  ;;  %v231_v17 = vld [vmem:[%s387_s4] ss:$0 sm:$0xff]  ;;  %s221_s3 = sshll.u32 %s304_s2, 4  ;;  %s222_s3 = int_to_ptr.vmem [resolvable:$true] %s221_s3 }
   0x9   :  { %259 = vmatpush3.msra.mxu1 %v110_v7  ;;  %s280_s4 = scalar_lea.vmem %s222_s3, 128  ;;  %p285_p1 = scmp.lt.s32.totalorder %s222_s3, %s222_s3 }
   0xa   :  { %260 = vmatprep.subr.mxu1 %v302_v1  ;;  %p281_p0 = scmp.ne.s32.totalorder %s222_s3, %s280_s4  ;;  %p286_p2 = scmp.lt.s32.totalorder %s280_s4, %s280_s4 }
   0xb   :  { %261 = vmatpush3.msra.mxu1 %v109_v8 }
   0xc   :  { %262 = vmatprep.subr.mxu1 %v302_v1  ;;  %p287_p3 = por %p286_p2, %p285_p1 }
   0xd   :  { %263 = vmatpush3.msra.mxu1 %v108_v9 }
   0xe   :  { %264 = vmatprep.subr.mxu1 %v302_v1  ;;  %p288_p4 = pnand %p287_p3, %p281_p0 }
   0xf   :  { %265 = vmatpush3.msra.mxu1 %v107_v10 }
  0x10   :  { %266 = vmatprep.subr.mxu1 %v302_v1 }
  0x11   :  { %267 = vmatpush3.msra.mxu1 %v106_v11 }
  0xc5   :  { %v101_v13 = vpop.f32.mrf.mxu0 }
  0xc6   :  { %v102_v14 = vadd.f32 %v229_v12, %v101_v13 }
  0xc7   :  { %v251_v15 = vpop.f32.mrf.mxu0 }
  0xc8   :  { %v105_v16 = vmax.f32 %v102_v14, 0.0 }
  0xca   :  { %269 = vmatmul.mubr.msk.f32.vlgmr.msra.gmra.mxu1 %vm121_vm2, %v105_v16 }
 0x18a   :  { %v191_v18 = vpop.f32.mrf.mxu1 }
 0x18b   :  { %v192_v19 = vadd.f32 %v231_v17, %v191_v18 }
 0x18c   :  { %v270_v20 = vpop.f32.mrf.mxu1 }
 0x18d   :  { %v196_v21 = vsel %vm195_vm3, %v192_v19, -inf }
 0x18e   :  { %197 = vmax.xlane.f32.xlu0 %v196_v21 }
 0x217   :  { %v198_v22 = vpop.xlane.xlu0 %197 }
 0x218   :  { %v199_v23 = vsub.f32 %v192_v19, %v198_v22 }
 0x21a   :  { %v200_v24 = vmul.f32 1.442695, %v199_v23 }
 0x21c   :  { %274 = vpow2.f32 %v200_v24 }
 0x229   :  { %v275_v25 = vpop.eup %274 }
 0x22a   :  { %v202_v26 = vsel %vm195_vm3, %v275_v25, 0.0 }
 0x22b   :  { %203 = vadd.xlane.f32.xlu0 %v202_v26 }
 0x2b4   :  { %v204_v27 = vpop.xlane.xlu0 %203 }
 0x2b5   :  { %276 = vrcp.f32 %v204_v27 }
 0x2c2   :  { %v277_v28 = vpop.eup %276 }
 0x2c3   :  { %v206_v29 = vmul.f32 %v277_v28, %v275_v25 }
 0x2c5   :  { %v207_v30 = vmax.f32 %v206_v29, 1e-08 }
 0x2c7   :  { %v208_v31 = vmin.f32 %v207_v30, 1.0 }
 0x2c9   :  { %v209_v32 = vsel %vm195_vm3, %v208_v31, 0.0 }
 0x2ca   :  { %210 = vadd.xlane.f32.xlu1 %v209_v32 }
 0x353   :  { %v211_v33 = vpop.xlane.xlu1 %210 }
 0x354   :  { %278 = vrcp.f32 %v211_v33 }
 0x361   :  { %v279_v34 = vpop.eup %278 }
 0x362   :  { %v213_v35 = vmul.f32 %v279_v34, %v208_v31 }
 0x364   :  { %214 = vst.msk [vmem:[#allocation2] sm:$0xff] %vm195_vm3, %v213_v35 }
 0x365   :  { %291 = shalt.err (!%p288_p4)
}
 0x366   :  { %224 = dma.vmem_to_hbm [thread:$0]  %s222_s3, 128, %s388_s5, [#allocation3]  }
 0x367   :  { %300 = dma.done.wait [#allocation3], 128  }
 0x368   :  { %301 = vsyncadd [#allocation3], 4294967168 }
 0x369   :  { %228 = vsyncpa [#allocation3], 1 }

</bundles_post_ra>
